<compile_context>
chip_gen: v5e
topology: v5e:2x2
jax: 0.10.0
libtpu: 0.0.40
codegen_flags: <defaults>
</compile_context>

<pallas_src>
import functools

import jax
import jax.numpy as jnp
from jax.experimental import pallas as pl
from jax.experimental.pallas import tpu as pltpu


def _seqggnn_kernel(
    embs_ref, w_adapt_ref, w_big_ref, bias_ref, w_out_ref, b_out_ref,
    pred_ref, h_scratch,
    *, numsteps: int, seq_len: int,
):
  f32 = jnp.float32
  bf16 = jnp.bfloat16
  H = w_adapt_ref.shape[1]
  nb = embs_ref.shape[0]              # rows in this block = bb * seq_len
  bb = nb // seq_len

  # emb_adapter (Linear, no bias): [nb, E] @ [E, H] -> [nb, H], f32 accumulate.
  h = jnp.dot(embs_ref[...], w_adapt_ref[...], preferred_element_type=f32)

  # Per-row chain masks from an iota (loop invariant, computed once).
  pos = jax.lax.broadcasted_iota(jnp.int32, (nb, 1), 0) % seq_len
  mp = (pos != 0).astype(f32)               # node has a predecessor
  mn = (pos != seq_len - 1).astype(f32)     # node has a successor

  # Loop-invariant fused parameters (hoisted once out of the step loop).
  w_big = w_big_ref[...]                    # [3H, 4H] bf16 (pre-composed)
  bias = bias_ref[...]                      # [nb, 4H] f32  (all biases fused)

  def step(_, h):
    # Neighbor states via XLU sublane rotation.  Masks zero every row that
    # has no predecessor/successor, covering both the wrap-around rows of
    # the rotation and the sequence boundaries inside the block.
    hp = pltpu.roll(h, shift=1, axis=0) * mp          # predecessor state
    hn = pltpu.roll(h, shift=nb - 1, axis=0) * mn     # successor state (-1)

    # Single fused matmul: message passing + all GRU gate projections.
    m = jnp.concatenate([hp, hn, h], axis=1).astype(bf16)        # [nb, 3H]
    g = jnp.dot(m, w_big, preferred_element_type=f32) + bias     # [nb, 4H]

    r = jax.nn.sigmoid(g[:, :H])
    z = jax.nn.sigmoid(g[:, H:2 * H])
    n = jnp.tanh(g[:, 2 * H:3 * H] + r * g[:, 3 * H:])
    return (1.0 - z) * n + z * h

  h = jax.lax.fori_loop(0, numsteps, step, h, unroll=True)

  # Last token of each sequence via strided row read (no selection matmul).
  h_scratch[...] = h
  last = h_scratch[pl.ds(seq_len - 1, bb, stride=seq_len), :]       # [bb, H]
  pred_ref[...] = (jnp.dot(last.astype(bf16), w_out_ref[...],
                           preferred_element_type=f32) + b_out_ref[...])


def seqggnn_forward(x, params, *, numsteps):
  """x: int32 [B, L] token ids. Returns logits [B, vocab] (float32)."""
  B, L = x.shape
  emb_table = params["emb"]                 # [V, E]
  E = emb_table.shape[1]
  H = params["w_adapt"].shape[1]
  V = params["w_out"].shape[1]
  f32, bf16 = jnp.float32, jnp.bfloat16

  # Batch blocking: whole sequences per block so the chain rotation stays
  # inside a block.  For large batches (B % 8 == 0) each program handles 8
  # sequences and the grid axis is "parallel" (2 TCs on v7x); toy -> grid=(1,).
  bb = 8 if (B % 8 == 0) else B
  grid = (B // bb,)
  nb = bb * L

  # --- glue: embedding gather + parameter fusion (host-side, one-time) ---
  embs = emb_table[x.reshape(-1)].astype(bf16)                       # [B*L, E]
  w_adapt = params["w_adapt"].astype(bf16)                           # [E, H]

  # Pre-composed step weight  [3H, 4H]:
  #   rows 0:H   (hp):  [ W_fwd@Wi_cat            | 0    ]
  #   rows H:2H  (hn):  [ W_bwd@Wi_cat            | 0    ]
  #   rows 2H:3H (h) :  [ W_self@Wi_cat + [Whr|Whz|0] | W_hn ]
  # columns: [ r | z | n_input | n_hidden ]
  wi_cat = jnp.concatenate(
      [params["w_ir"], params["w_iz"], params["w_in"]], axis=1)     # [H, 3H]
  zH = jnp.zeros((H, H), f32)
  row_fwd = jnp.concatenate([params["w_fwd"] @ wi_cat, zH], axis=1)
  row_bwd = jnp.concatenate([params["w_bwd"] @ wi_cat, zH], axis=1)
  wh_rz = jnp.concatenate([params["w_hr"], params["w_hz"], zH], axis=1)
  row_self = jnp.concatenate(
      [params["w_self"] @ wi_cat + wh_rz, params["w_hn"]], axis=1)
  w_big = jnp.concatenate([row_fwd, row_bwd, row_self], axis=0).astype(bf16)

  # Fused per-row bias [nb, 4H] (boundary-masked edge biases + GRU biases).
  # The mask pattern repeats per sequence -> identical for every batch block.
  pos = jnp.arange(nb) % L
  mp = (pos != 0).astype(f32)[:, None]
  mn = (pos != L - 1).astype(f32)[:, None]
  b_msg = params["b_fwd"] * mp + params["b_bwd"] * mn + params["b_self"]  # [nb, H]
  b_i_rows = b_msg @ wi_cat + jnp.concatenate(
      [params["b_ir"] + params["b_hr"],
       params["b_iz"] + params["b_hz"],
       params["b_in"]], axis=1)                                      # [nb, 3H]
  b_hn_rows = jnp.broadcast_to(params["b_hn"], (nb, H))
  bias_rows = jnp.concatenate([b_i_rows, b_hn_rows], axis=1)         # [nb, 4H]

  w_out = params["w_out"].astype(bf16)                               # [H, V]
  b_out = params["b_out"]                                            # [1, V]

  inv = lambda i: (0, 0)   # grid-invariant blocks (weights / biases)

  grid_spec = pltpu.PrefetchScalarGridSpec(
      num_scalar_prefetch=0,
      grid=grid,
      in_specs=[
          pl.BlockSpec((nb, E), lambda i: (i, 0)),      # embs
          pl.BlockSpec((E, H), inv),                    # w_adapt
          pl.BlockSpec((3 * H, 4 * H), inv),            # w_big (fused step W)
          pl.BlockSpec((nb, 4 * H), inv),               # bias_rows (fused b)
          pl.BlockSpec((H, V), inv),                    # w_out
          pl.BlockSpec((1, V), inv),                    # b_out
      ],
      out_specs=pl.BlockSpec((bb, V), lambda i: (i, 0)),
      scratch_shapes=[pltpu.VMEM((nb, H), jnp.float32)],
  )

  return pl.pallas_call(
      functools.partial(_seqggnn_kernel, numsteps=numsteps, seq_len=L),
      out_shape=jax.ShapeDtypeStruct((B, V), jnp.float32),
      grid_spec=grid_spec,
      compiler_params=pltpu.CompilerParams(
          dimension_semantics=("parallel",),
          vmem_limit_bytes=64 * 1024 * 1024),
  )(embs, w_adapt, w_big, bias_rows, w_out, b_out)


def _reference_forward(x, params, *, numsteps):
  """Pure-JAX f32 reference (unfused math) for the correctness check."""
  B, L = x.shape
  embs = params["emb"][x.reshape(-1)]
  h = embs @ params["w_adapt"]
  N = B * L
  pos = jnp.arange(N) % L
  mp = (pos != 0).astype(jnp.float32)[:, None]
  mn = (pos != (L - 1)).astype(jnp.float32)[:, None]
  zrow = jnp.zeros((1, h.shape[1]), jnp.float32)
  for _ in range(numsteps):
    hp = jnp.concatenate([zrow, h[:-1]], 0) * mp
    hn = jnp.concatenate([h[1:], zrow], 0) * mn
    a = (hp @ params["w_fwd"] + params["b_fwd"]) * mp
    a += (hn @ params["w_bwd"] + params["b_bwd"]) * mn
    a += h @ params["w_self"] + params["b_self"]
    r = jax.nn.sigmoid(a @ params["w_ir"] + params["b_ir"]
                       + h @ params["w_hr"] + params["b_hr"])
    z = jax.nn.sigmoid(a @ params["w_iz"] + params["b_iz"]
                       + h @ params["w_hz"] + params["b_hz"])
    n = jnp.tanh(a @ params["w_in"] + params["b_in"]
                 + r * (h @ params["w_hn"] + params["b_hn"]))
    h = (1.0 - z) * n + z * h
  last = h.reshape(B, L, -1)[:, -1, :]
  return last @ params["w_out"] + params["b_out"]


def make_params(key, *, vocab, embdim, hdim):
  ks = jax.random.split(key, 24)
  s = 0.1
  nrm = lambda k, shape: (s * jax.random.normal(k, shape)).astype(jnp.float32)
  return {
      "emb": nrm(ks[0], (vocab, embdim)),
      "w_adapt": nrm(ks[1], (embdim, hdim)),
      "w_fwd": nrm(ks[2], (hdim, hdim)), "b_fwd": nrm(ks[3], (1, hdim)),
      "w_bwd": nrm(ks[4], (hdim, hdim)), "b_bwd": nrm(ks[5], (1, hdim)),
      "w_self": nrm(ks[6], (hdim, hdim)), "b_self": nrm(ks[7], (1, hdim)),
      "w_ir": nrm(ks[8], (hdim, hdim)), "w_iz": nrm(ks[9], (hdim, hdim)),
      "w_in": nrm(ks[10], (hdim, hdim)),
      "b_ir": nrm(ks[11], (1, hdim)), "b_iz": nrm(ks[12], (1, hdim)),
      "b_in": nrm(ks[13], (1, hdim)),
      "w_hr": nrm(ks[14], (hdim, hdim)), "w_hz": nrm(ks[15], (hdim, hdim)),
      "w_hn": nrm(ks[16], (hdim, hdim)),
      "b_hr": nrm(ks[17], (1, hdim)), "b_hz": nrm(ks[18], (1, hdim)),
      "b_hn": nrm(ks[19], (1, hdim)),
      "w_out": nrm(ks[20], (hdim, vocab)), "b_out": nrm(ks[21], (1, vocab)),
  }


if __name__ == "__main__":
  # Small shapes consistent with the module's forward:
  B, L = 2, 8          # batch, sequence length (maxlen)
  EMBDIM, HDIM = 16, 32
  VOCAB = 128          # vocab.number_of_ids()
  NUMSTEPS = 5

  key = jax.random.PRNGKey(0)
  k_par, k_x = jax.random.split(key)
  params = make_params(k_par, vocab=VOCAB, embdim=EMBDIM, hdim=HDIM)
  x = jax.random.randint(k_x, (B, L), 0, VOCAB, dtype=jnp.int32)

  pred = jax.block_until_ready(seqggnn_forward(x, params, numsteps=NUMSTEPS))
  ref = jax.block_until_ready(_reference_forward(x, params, numsteps=NUMSTEPS))

  assert pred.shape == (B, VOCAB)
  if not jnp.allclose(pred, ref, atol=1e-2, rtol=1e-2):
    raise AssertionError("Pallas kernel output mismatch vs reference")

  print("KERNEL_OK")
</pallas_src>

<mosaic_0001>
module attributes {stable_mosaic.version = 11 : i64} {
  func.func @_seqggnn_kernel(%arg0: i32, %arg1: memref<16x16xbf16, #tpu.memory_space<vmem>>, %arg2: memref<16x32xbf16, #tpu.memory_space<vmem>>, %arg3: memref<96x128xbf16, #tpu.memory_space<vmem>>, %arg4: memref<16x128xf32, #tpu.memory_space<vmem>>, %arg5: memref<32x128xbf16, #tpu.memory_space<vmem>>, %arg6: memref<1x128xf32, #tpu.memory_space<vmem>>, %arg7: memref<2x128xf32, #tpu.memory_space<vmem>>, %arg8: memref<16x32xf32, #tpu.memory_space<vmem>>) attributes {dimension_semantics = [#tpu.dimension_semantics<parallel>], iteration_bounds = array<i64: 1>, scalar_prefetch = 0 : i64, scratch_operands = 1 : i64, tpu.core_type = #tpu.core_type<tc>, window_params = [{transform_indices = @transform_0, window_bounds = array<i64: 16, 16>}, {pipeline_mode = #tpu.pipeline_mode<synchronous>, transform_indices = @transform_1, window_bounds = array<i64: 16, 32>}, {pipeline_mode = #tpu.pipeline_mode<synchronous>, transform_indices = @transform_2, window_bounds = array<i64: 96, 128>}, {pipeline_mode = #tpu.pipeline_mode<synchronous>, transform_indices = @transform_3, window_bounds = array<i64: 16, 128>}, {pipeline_mode = #tpu.pipeline_mode<synchronous>, transform_indices = @transform_4, window_bounds = array<i64: 32, 128>}, {pipeline_mode = #tpu.pipeline_mode<synchronous>, transform_indices = @transform_5, window_bounds = array<i64: 1, 128>}, {transform_indices = @transform_6, window_bounds = array<i64: 2, 128>}]} {
    %c0 = arith.constant 0 : index
    %c0_0 = arith.constant 0 : index
    %0 = vector.load %arg1[%c0, %c0_0] : memref<16x16xbf16, #tpu.memory_space<vmem>>, vector<16x16xbf16>
    %c0_1 = arith.constant 0 : index
    %c0_2 = arith.constant 0 : index
    %1 = vector.load %arg2[%c0_1, %c0_2] : memref<16x32xbf16, #tpu.memory_space<vmem>>, vector<16x32xbf16>
    %cst = arith.constant dense<0.000000e+00> : vector<16x32xf32>
    %2 = tpu.matmul %0, %1, %cst {dimension_numbers = #tpu.dot_dimension_numbers<[1], [0], [0], [1], [0, 0, 1, 1], [], []>} : vector<16x16xbf16>, vector<16x32xbf16>, vector<16x32xf32> -> vector<16x32xf32>
    %3 = tpu.iota {dimensions = array<i32: 0>} : vector<16x1xi32>
    %c8_i32 = arith.constant 8 : i32
    %c0_i32 = arith.constant 0 : i32
    %4 = arith.cmpi eq, %c8_i32, %c0_i32 : i32
    %c1_i32 = arith.constant 1 : i32
    %5 = arith.select %4, %c1_i32, %c8_i32 : i32
    %6 = vector.broadcast %5 : i32 to vector<16x1xi32>
    %7 = arith.remsi %3, %6 : vector<16x1xi32>
    %c0_i32_3 = arith.constant 0 : i32
    %8 = vector.broadcast %c0_i32_3 : i32 to vector<16x1xi32>
    %9 = arith.cmpi ne, %7, %8 : vector<16x1xi32>
    %c0_i32_4 = arith.constant 0 : i32
    %10 = vector.broadcast %c0_i32_4 : i32 to vector<16x1xi32>
    %11 = arith.cmpi slt, %7, %10 : vector<16x1xi32>
    %c0_i32_5 = arith.constant 0 : i32
    %12 = arith.cmpi slt, %5, %c0_i32_5 : i32
    %13 = vector.broadcast %12 : i1 to vector<16x1xi1>
    %14 = vector.broadcast %13 : vector<16x1xi1> to vector<16x1xi1>
    %15 = arith.xori %11, %14 : vector<16x1xi1>
    %16 = arith.andi %15, %9 : vector<16x1xi1>
    %17 = vector.broadcast %5 : i32 to vector<16x1xi32>
    %18 = arith.addi %7, %17 : vector<16x1xi32>
    %19 = arith.select %16, %18, %7 : vector<16x1xi1>, vector<16x1xi32>
    %c0_i32_6 = arith.constant 0 : i32
    %20 = vector.broadcast %c0_i32_6 : i32 to vector<16x1xi32>
    %21 = arith.cmpi ne, %19, %20 : vector<16x1xi32>
    %22 = arith.extui %21 : vector<16x1xi1> to vector<16x1xi32>
    %23 = arith.sitofp %22 : vector<16x1xi32> to vector<16x1xf32>
    %c7_i32 = arith.constant 7 : i32
    %24 = vector.broadcast %c7_i32 : i32 to vector<16x1xi32>
    %25 = arith.cmpi ne, %19, %24 : vector<16x1xi32>
    %26 = arith.extui %25 : vector<16x1xi1> to vector<16x1xi32>
    %27 = arith.sitofp %26 : vector<16x1xi32> to vector<16x1xf32>
    %c0_7 = arith.constant 0 : index
    %c0_8 = arith.constant 0 : index
    %28 = vector.load %arg3[%c0_7, %c0_8] : memref<96x128xbf16, #tpu.memory_space<vmem>>, vector<96x128xbf16>
    %c0_9 = arith.constant 0 : index
    %c0_10 = arith.constant 0 : index
    %29 = vector.load %arg4[%c0_9, %c0_10] : memref<16x128xf32, #tpu.memory_space<vmem>>, vector<16x128xf32>
    %c0_i32_11 = arith.constant 0 : i32
    %c1_i32_12 = arith.constant 1 : i32
    %30 = tpu.dynamic_rotate %2 by %c1_i32_12 dim 0 : vector<16x32xf32>, i32 -> vector<16x32xf32>
    %31 = vector.broadcast %23 : vector<16x1xf32> to vector<16x32xf32>
    %32 = arith.mulf %30, %31 : vector<16x32xf32>
    %c15_i32 = arith.constant 15 : i32
    %33 = tpu.dynamic_rotate %2 by %c15_i32 dim 0 : vector<16x32xf32>, i32 -> vector<16x32xf32>
    %34 = vector.broadcast %27 : vector<16x1xf32> to vector<16x32xf32>
    %35 = arith.mulf %33, %34 : vector<16x32xf32>
    %36 = tpu.concatenate %32, %35, %2 in 1 : vector<16x32xf32>, vector<16x32xf32>, vector<16x32xf32> -> vector<16x96xf32>
    %37 = arith.truncf %36 : vector<16x96xf32> to vector<16x96xbf16>
    %cst_13 = arith.constant dense<0.000000e+00> : vector<16x128xf32>
    %38 = tpu.matmul %37, %28, %cst_13 {dimension_numbers = #tpu.dot_dimension_numbers<[1], [0], [0], [1], [0, 0, 1, 1], [], []>} : vector<16x96xbf16>, vector<96x128xbf16>, vector<16x128xf32> -> vector<16x128xf32>
    %39 = arith.addf %38, %29 : vector<16x128xf32>
    %40 = vector.extract_strided_slice %39 {offsets = [0, 0], sizes = [16, 32], strides = [1, 1]} : vector<16x128xf32> to vector<16x32xf32>
    %41 = arith.negf %40 : vector<16x32xf32>
    %42 = math.exp %41 : vector<16x32xf32>
    %cst_14 = arith.constant 1.000000e+00 : f32
    %43 = vector.broadcast %cst_14 : f32 to vector<16x32xf32>
    %44 = arith.addf %43, %42 : vector<16x32xf32>
    %45 = arith.divf %43, %44 : vector<16x32xf32>
    %46 = vector.extract_strided_slice %39 {offsets = [0, 32], sizes = [16, 32], strides = [1, 1]} : vector<16x128xf32> to vector<16x32xf32>
    %47 = arith.negf %46 : vector<16x32xf32>
    %48 = math.exp %47 : vector<16x32xf32>
    %cst_15 = arith.constant 1.000000e+00 : f32
    %49 = vector.broadcast %cst_15 : f32 to vector<16x32xf32>
    %50 = arith.addf %49, %48 : vector<16x32xf32>
    %51 = arith.divf %49, %50 : vector<16x32xf32>
    %52 = vector.extract_strided_slice %39 {offsets = [0, 64], sizes = [16, 32], strides = [1, 1]} : vector<16x128xf32> to vector<16x32xf32>
    %53 = vector.extract_strided_slice %39 {offsets = [0, 96], sizes = [16, 32], strides = [1, 1]} : vector<16x128xf32> to vector<16x32xf32>
    %54 = arith.mulf %45, %53 : vector<16x32xf32>
    %55 = arith.addf %52, %54 : vector<16x32xf32>
    %56 = math.tanh %55 : vector<16x32xf32>
    %cst_16 = arith.constant 1.000000e+00 : f32
    %57 = vector.broadcast %cst_16 : f32 to vector<16x32xf32>
    %58 = arith.subf %57, %51 : vector<16x32xf32>
    %59 = arith.mulf %58, %56 : vector<16x32xf32>
    %60 = arith.mulf %51, %2 : vector<16x32xf32>
    %61 = arith.addf %59, %60 : vector<16x32xf32>
    %c1_i32_17 = arith.constant 1 : i32
    %c1_i32_18 = arith.constant 1 : i32
    %62 = tpu.dynamic_rotate %61 by %c1_i32_18 dim 0 : vector<16x32xf32>, i32 -> vector<16x32xf32>
    %63 = vector.broadcast %23 : vector<16x1xf32> to vector<16x32xf32>
    %64 = arith.mulf %62, %63 : vector<16x32xf32>
    %c15_i32_19 = arith.constant 15 : i32
    %65 = tpu.dynamic_rotate %61 by %c15_i32_19 dim 0 : vector<16x32xf32>, i32 -> vector<16x32xf32>
    %66 = vector.broadcast %27 : vector<16x1xf32> to vector<16x32xf32>
    %67 = arith.mulf %65, %66 : vector<16x32xf32>
    %68 = tpu.concatenate %64, %67, %61 in 1 : vector<16x32xf32>, vector<16x32xf32>, vector<16x32xf32> -> vector<16x96xf32>
    %69 = arith.truncf %68 : vector<16x96xf32> to vector<16x96xbf16>
    %cst_20 = arith.constant dense<0.000000e+00> : vector<16x128xf32>
    %70 = tpu.matmul %69, %28, %cst_20 {dimension_numbers = #tpu.dot_dimension_numbers<[1], [0], [0], [1], [0, 0, 1, 1], [], []>} : vector<16x96xbf16>, vector<96x128xbf16>, vector<16x128xf32> -> vector<16x128xf32>
    %71 = arith.addf %70, %29 : vector<16x128xf32>
    %72 = vector.extract_strided_slice %71 {offsets = [0, 0], sizes = [16, 32], strides = [1, 1]} : vector<16x128xf32> to vector<16x32xf32>
    %73 = arith.negf %72 : vector<16x32xf32>
    %74 = math.exp %73 : vector<16x32xf32>
    %cst_21 = arith.constant 1.000000e+00 : f32
    %75 = vector.broadcast %cst_21 : f32 to vector<16x32xf32>
    %76 = arith.addf %75, %74 : vector<16x32xf32>
    %77 = arith.divf %75, %76 : vector<16x32xf32>
    %78 = vector.extract_strided_slice %71 {offsets = [0, 32], sizes = [16, 32], strides = [1, 1]} : vector<16x128xf32> to vector<16x32xf32>
    %79 = arith.negf %78 : vector<16x32xf32>
    %80 = math.exp %79 : vector<16x32xf32>
    %cst_22 = arith.constant 1.000000e+00 : f32
    %81 = vector.broadcast %cst_22 : f32 to vector<16x32xf32>
    %82 = arith.addf %81, %80 : vector<16x32xf32>
    %83 = arith.divf %81, %82 : vector<16x32xf32>
    %84 = vector.extract_strided_slice %71 {offsets = [0, 64], sizes = [16, 32], strides = [1, 1]} : vector<16x128xf32> to vector<16x32xf32>
    %85 = vector.extract_strided_slice %71 {offsets = [0, 96], sizes = [16, 32], strides = [1, 1]} : vector<16x128xf32> to vector<16x32xf32>
    %86 = arith.mulf %77, %85 : vector<16x32xf32>
    %87 = arith.addf %84, %86 : vector<16x32xf32>
    %88 = math.tanh %87 : vector<16x32xf32>
    %cst_23 = arith.constant 1.000000e+00 : f32
    %89 = vector.broadcast %cst_23 : f32 to vector<16x32xf32>
    %90 = arith.subf %89, %83 : vector<16x32xf32>
    %91 = arith.mulf %90, %88 : vector<16x32xf32>
    %92 = arith.mulf %83, %61 : vector<16x32xf32>
    %93 = arith.addf %91, %92 : vector<16x32xf32>
    %c2_i32 = arith.constant 2 : i32
    %c1_i32_24 = arith.constant 1 : i32
    %94 = tpu.dynamic_rotate %93 by %c1_i32_24 dim 0 : vector<16x32xf32>, i32 -> vector<16x32xf32>
    %95 = vector.broadcast %23 : vector<16x1xf32> to vector<16x32xf32>
    %96 = arith.mulf %94, %95 : vector<16x32xf32>
    %c15_i32_25 = arith.constant 15 : i32
    %97 = tpu.dynamic_rotate %93 by %c15_i32_25 dim 0 : vector<16x32xf32>, i32 -> vector<16x32xf32>
    %98 = vector.broadcast %27 : vector<16x1xf32> to vector<16x32xf32>
    %99 = arith.mulf %97, %98 : vector<16x32xf32>
    %100 = tpu.concatenate %96, %99, %93 in 1 : vector<16x32xf32>, vector<16x32xf32>, vector<16x32xf32> -> vector<16x96xf32>
    %101 = arith.truncf %100 : vector<16x96xf32> to vector<16x96xbf16>
    %cst_26 = arith.constant dense<0.000000e+00> : vector<16x128xf32>
    %102 = tpu.matmul %101, %28, %cst_26 {dimension_numbers = #tpu.dot_dimension_numbers<[1], [0], [0], [1], [0, 0, 1, 1], [], []>} : vector<16x96xbf16>, vector<96x128xbf16>, vector<16x128xf32> -> vector<16x128xf32>
    %103 = arith.addf %102, %29 : vector<16x128xf32>
    %104 = vector.extract_strided_slice %103 {offsets = [0, 0], sizes = [16, 32], strides = [1, 1]} : vector<16x128xf32> to vector<16x32xf32>
    %105 = arith.negf %104 : vector<16x32xf32>
    %106 = math.exp %105 : vector<16x32xf32>
    %cst_27 = arith.constant 1.000000e+00 : f32
    %107 = vector.broadcast %cst_27 : f32 to vector<16x32xf32>
    %108 = arith.addf %107, %106 : vector<16x32xf32>
    %109 = arith.divf %107, %108 : vector<16x32xf32>
    %110 = vector.extract_strided_slice %103 {offsets = [0, 32], sizes = [16, 32], strides = [1, 1]} : vector<16x128xf32> to vector<16x32xf32>
    %111 = arith.negf %110 : vector<16x32xf32>
    %112 = math.exp %111 : vector<16x32xf32>
    %cst_28 = arith.constant 1.000000e+00 : f32
    %113 = vector.broadcast %cst_28 : f32 to vector<16x32xf32>
    %114 = arith.addf %113, %112 : vector<16x32xf32>
    %115 = arith.divf %113, %114 : vector<16x32xf32>
    %116 = vector.extract_strided_slice %103 {offsets = [0, 64], sizes = [16, 32], strides = [1, 1]} : vector<16x128xf32> to vector<16x32xf32>
    %117 = vector.extract_strided_slice %103 {offsets = [0, 96], sizes = [16, 32], strides = [1, 1]} : vector<16x128xf32> to vector<16x32xf32>
    %118 = arith.mulf %109, %117 : vector<16x32xf32>
    %119 = arith.addf %116, %118 : vector<16x32xf32>
    %120 = math.tanh %119 : vector<16x32xf32>
    %cst_29 = arith.constant 1.000000e+00 : f32
    %121 = vector.broadcast %cst_29 : f32 to vector<16x32xf32>
    %122 = arith.subf %121, %115 : vector<16x32xf32>
    %123 = arith.mulf %122, %120 : vector<16x32xf32>
    %124 = arith.mulf %115, %93 : vector<16x32xf32>
    %125 = arith.addf %123, %124 : vector<16x32xf32>
    %c3_i32 = arith.constant 3 : i32
    %c1_i32_30 = arith.constant 1 : i32
    %126 = tpu.dynamic_rotate %125 by %c1_i32_30 dim 0 : vector<16x32xf32>, i32 -> vector<16x32xf32>
    %127 = vector.broadcast %23 : vector<16x1xf32> to vector<16x32xf32>
    %128 = arith.mulf %126, %127 : vector<16x32xf32>
    %c15_i32_31 = arith.constant 15 : i32
    %129 = tpu.dynamic_rotate %125 by %c15_i32_31 dim 0 : vector<16x32xf32>, i32 -> vector<16x32xf32>
    %130 = vector.broadcast %27 : vector<16x1xf32> to vector<16x32xf32>
    %131 = arith.mulf %129, %130 : vector<16x32xf32>
    %132 = tpu.concatenate %128, %131, %125 in 1 : vector<16x32xf32>, vector<16x32xf32>, vector<16x32xf32> -> vector<16x96xf32>
    %133 = arith.truncf %132 : vector<16x96xf32> to vector<16x96xbf16>
    %cst_32 = arith.constant dense<0.000000e+00> : vector<16x128xf32>
    %134 = tpu.matmul %133, %28, %cst_32 {dimension_numbers = #tpu.dot_dimension_numbers<[1], [0], [0], [1], [0, 0, 1, 1], [], []>} : vector<16x96xbf16>, vector<96x128xbf16>, vector<16x128xf32> -> vector<16x128xf32>
    %135 = arith.addf %134, %29 : vector<16x128xf32>
    %136 = vector.extract_strided_slice %135 {offsets = [0, 0], sizes = [16, 32], strides = [1, 1]} : vector<16x128xf32> to vector<16x32xf32>
    %137 = arith.negf %136 : vector<16x32xf32>
    %138 = math.exp %137 : vector<16x32xf32>
    %cst_33 = arith.constant 1.000000e+00 : f32
    %139 = vector.broadcast %cst_33 : f32 to vector<16x32xf32>
    %140 = arith.addf %139, %138 : vector<16x32xf32>
    %141 = arith.divf %139, %140 : vector<16x32xf32>
    %142 = vector.extract_strided_slice %135 {offsets = [0, 32], sizes = [16, 32], strides = [1, 1]} : vector<16x128xf32> to vector<16x32xf32>
    %143 = arith.negf %142 : vector<16x32xf32>
    %144 = math.exp %143 : vector<16x32xf32>
    %cst_34 = arith.constant 1.000000e+00 : f32
    %145 = vector.broadcast %cst_34 : f32 to vector<16x32xf32>
    %146 = arith.addf %145, %144 : vector<16x32xf32>
    %147 = arith.divf %145, %146 : vector<16x32xf32>
    %148 = vector.extract_strided_slice %135 {offsets = [0, 64], sizes = [16, 32], strides = [1, 1]} : vector<16x128xf32> to vector<16x32xf32>
    %149 = vector.extract_strided_slice %135 {offsets = [0, 96], sizes = [16, 32], strides = [1, 1]} : vector<16x128xf32> to vector<16x32xf32>
    %150 = arith.mulf %141, %149 : vector<16x32xf32>
    %151 = arith.addf %148, %150 : vector<16x32xf32>
    %152 = math.tanh %151 : vector<16x32xf32>
    %cst_35 = arith.constant 1.000000e+00 : f32
    %153 = vector.broadcast %cst_35 : f32 to vector<16x32xf32>
    %154 = arith.subf %153, %147 : vector<16x32xf32>
    %155 = arith.mulf %154, %152 : vector<16x32xf32>
    %156 = arith.mulf %147, %125 : vector<16x32xf32>
    %157 = arith.addf %155, %156 : vector<16x32xf32>
    %c4_i32 = arith.constant 4 : i32
    %c1_i32_36 = arith.constant 1 : i32
    %158 = tpu.dynamic_rotate %157 by %c1_i32_36 dim 0 : vector<16x32xf32>, i32 -> vector<16x32xf32>
    %159 = vector.broadcast %23 : vector<16x1xf32> to vector<16x32xf32>
    %160 = arith.mulf %158, %159 : vector<16x32xf32>
    %c15_i32_37 = arith.constant 15 : i32
    %161 = tpu.dynamic_rotate %157 by %c15_i32_37 dim 0 : vector<16x32xf32>, i32 -> vector<16x32xf32>
    %162 = vector.broadcast %27 : vector<16x1xf32> to vector<16x32xf32>
    %163 = arith.mulf %161, %162 : vector<16x32xf32>
    %164 = tpu.concatenate %160, %163, %157 in 1 : vector<16x32xf32>, vector<16x32xf32>, vector<16x32xf32> -> vector<16x96xf32>
    %165 = arith.truncf %164 : vector<16x96xf32> to vector<16x96xbf16>
    %cst_38 = arith.constant dense<0.000000e+00> : vector<16x128xf32>
    %166 = tpu.matmul %165, %28, %cst_38 {dimension_numbers = #tpu.dot_dimension_numbers<[1], [0], [0], [1], [0, 0, 1, 1], [], []>} : vector<16x96xbf16>, vector<96x128xbf16>, vector<16x128xf32> -> vector<16x128xf32>
    %167 = arith.addf %166, %29 : vector<16x128xf32>
    %168 = vector.extract_strided_slice %167 {offsets = [0, 0], sizes = [16, 32], strides = [1, 1]} : vector<16x128xf32> to vector<16x32xf32>
    %169 = arith.negf %168 : vector<16x32xf32>
    %170 = math.exp %169 : vector<16x32xf32>
    %cst_39 = arith.constant 1.000000e+00 : f32
    %171 = vector.broadcast %cst_39 : f32 to vector<16x32xf32>
    %172 = arith.addf %171, %170 : vector<16x32xf32>
    %173 = arith.divf %171, %172 : vector<16x32xf32>
    %174 = vector.extract_strided_slice %167 {offsets = [0, 32], sizes = [16, 32], strides = [1, 1]} : vector<16x128xf32> to vector<16x32xf32>
    %175 = arith.negf %174 : vector<16x32xf32>
    %176 = math.exp %175 : vector<16x32xf32>
    %cst_40 = arith.constant 1.000000e+00 : f32
    %177 = vector.broadcast %cst_40 : f32 to vector<16x32xf32>
    %178 = arith.addf %177, %176 : vector<16x32xf32>
    %179 = arith.divf %177, %178 : vector<16x32xf32>
    %180 = vector.extract_strided_slice %167 {offsets = [0, 64], sizes = [16, 32], strides = [1, 1]} : vector<16x128xf32> to vector<16x32xf32>
    %181 = vector.extract_strided_slice %167 {offsets = [0, 96], sizes = [16, 32], strides = [1, 1]} : vector<16x128xf32> to vector<16x32xf32>
    %182 = arith.mulf %173, %181 : vector<16x32xf32>
    %183 = arith.addf %180, %182 : vector<16x32xf32>
    %184 = math.tanh %183 : vector<16x32xf32>
    %cst_41 = arith.constant 1.000000e+00 : f32
    %185 = vector.broadcast %cst_41 : f32 to vector<16x32xf32>
    %186 = arith.subf %185, %179 : vector<16x32xf32>
    %187 = arith.mulf %186, %184 : vector<16x32xf32>
    %188 = arith.mulf %179, %157 : vector<16x32xf32>
    %189 = arith.addf %187, %188 : vector<16x32xf32>
    %c0_42 = arith.constant 0 : index
    %c0_43 = arith.constant 0 : index
    %190 = vector.load %arg8[%c0_42, %c0_43] : memref<16x32xf32, #tpu.memory_space<vmem>>, vector<16x32xf32>
    tpu.vector_store %arg8[%c0_42, %c0_43], %189 {strides = array<i32>} : memref<16x32xf32, #tpu.memory_space<vmem>>, vector<16x32xf32>,
    %c7 = arith.constant 7 : index
    %c0_44 = arith.constant 0 : index
    %191 = tpu.strided_load %arg8[%c7, %c0_44] {strides = array<i32: 8, 1>} : memref<16x32xf32, #tpu.memory_space<vmem>>, vector<2x32xf32>
    %192 = arith.truncf %191 : vector<2x32xf32> to vector<2x32xbf16>
    %c0_45 = arith.constant 0 : index
    %c0_46 = arith.constant 0 : index
    %193 = vector.load %arg5[%c0_45, %c0_46] : memref<32x128xbf16, #tpu.memory_space<vmem>>, vector<32x128xbf16>
    %cst_47 = arith.constant dense<0.000000e+00> : vector<2x128xf32>
    %194 = tpu.matmul %192, %193, %cst_47 {dimension_numbers = #tpu.dot_dimension_numbers<[1], [0], [0], [1], [0, 0, 1, 1], [], []>} : vector<2x32xbf16>, vector<32x128xbf16>, vector<2x128xf32> -> vector<2x128xf32>
    %c0_48 = arith.constant 0 : index
    %c0_49 = arith.constant 0 : index
    %195 = vector.load %arg6[%c0_48, %c0_49] : memref<1x128xf32, #tpu.memory_space<vmem>>, vector<1x128xf32>
    %196 = vector.broadcast %195 : vector<1x128xf32> to vector<2x128xf32>
    %197 = arith.addf %194, %196 : vector<2x128xf32>
    %c0_50 = arith.constant 0 : index
    %c0_51 = arith.constant 0 : index
    %198 = vector.load %arg7[%c0_50, %c0_51] : memref<2x128xf32, #tpu.memory_space<vmem>>, vector<2x128xf32>
    tpu.vector_store %arg7[%c0_50, %c0_51], %197 {strides = array<i32>} : memref<2x128xf32, #tpu.memory_space<vmem>>, vector<2x128xf32>,
    return
  }
  func.func @transform_0(%arg0: i32) -> (i32, i32) {
    %c0_i32 = arith.constant 0 : i32
    %c0_i32_0 = arith.constant 0 : i32
    return %arg0, %c0_i32 : i32, i32
  }
  func.func @transform_1(%arg0: i32) -> (i32, i32) {
    %c0_i32 = arith.constant 0 : i32
    %c0_i32_0 = arith.constant 0 : i32
    %c0_i32_1 = arith.constant 0 : i32
    return %c0_i32, %c0_i32_0 : i32, i32
  }
  func.func @transform_2(%arg0: i32) -> (i32, i32) {
    %c0_i32 = arith.constant 0 : i32
    %c0_i32_0 = arith.constant 0 : i32
    %c0_i32_1 = arith.constant 0 : i32
    return %c0_i32, %c0_i32_0 : i32, i32
  }
  func.func @transform_3(%arg0: i32) -> (i32, i32) {
    %c0_i32 = arith.constant 0 : i32
    %c0_i32_0 = arith.constant 0 : i32
    %c0_i32_1 = arith.constant 0 : i32
    return %c0_i32, %c0_i32_0 : i32, i32
  }
  func.func @transform_4(%arg0: i32) -> (i32, i32) {
    %c0_i32 = arith.constant 0 : i32
    %c0_i32_0 = arith.constant 0 : i32
    %c0_i32_1 = arith.constant 0 : i32
    return %c0_i32, %c0_i32_0 : i32, i32
  }
  func.func @transform_5(%arg0: i32) -> (i32, i32) {
    %c0_i32 = arith.constant 0 : i32
    %c0_i32_0 = arith.constant 0 : i32
    %c0_i32_1 = arith.constant 0 : i32
    return %c0_i32, %c0_i32_0 : i32, i32
  }
  func.func @transform_6(%arg0: i32) -> (i32, i32) {
    %c0_i32 = arith.constant 0 : i32
    %c0_i32_0 = arith.constant 0 : i32
    return %arg0, %c0_i32 : i32, i32
  }
}

</mosaic_0001>

<bundles_post_ra>
// kernel: tpu_custom_call.1
= control target key start
LH: loop header
LB: loop body
LE: loop exit
PB: predicated region body
PF: predicated region fallthrough
CT: control target
= control target key end

     0   :  { %11 = vsyncpa [#allocation4], 0  ;;  %s1607_s0 = inlined_call_operand.hbm [shape: bf16[16,16], index: 0, kind: input, shape index: {}]   ;;  %s1608_s1 = inlined_call_operand.hbm [shape: bf16[16,32], index: 1, kind: input, shape index: {}]   ;;  %s1609_s2 = inlined_call_operand.hbm [shape: bf16[96,128], index: 2, kind: input, shape index: {}]   ;;  %s1610_s3 = inlined_call_operand.hbm [shape: f32[16,128], index: 3, kind: input, shape index: {}]   ;;  %s1611_s4 = inlined_call_operand.hbm [shape: bf16[32,128], index: 4, kind: input, shape index: {}]   ;;  %s1612_s5 = inlined_call_operand.vmem [shape: f32[1,128], index: 5, kind: input, shape index: {}]   ;;  %s1613_s6 = inlined_call_operand.hbm [shape: f32[2,128], index: 6, kind: output, shape index: {}]  }
   0x1   :  { %12 = vsyncpa [#allocation7], 0 }
   0x2   :  { %13 = vsyncpa [#allocation10], 0 }
   0x3   :  { %14 = vsyncpa [#allocation5], 0  ;;  %s32_s23 = sshll.u32 %s1608_s1, 4  ;;  %s1306_s24 = smov [#allocation6]   ;;  %s33_s23 = int_to_ptr.hbm [resolvable:$true] %s32_s23 }
   0x4   :  { %s34_s25 = sshll.u32 %s1306_s24, 4  ;;  %s58_s28 = sshll.u32 %s1610_s3, 4  ;;  %s35_s25 = int_to_ptr.vmem [resolvable:$true] %s34_s25  ;;  %s59_s28 = int_to_ptr.hbm [resolvable:$true] %s58_s28 }
   0x5   :  { %s1307_s29 = smov 64   ;;  %s1308_s30 = smov 4  }
   0x6   :  { %40 = dma.hbm_to_vmem [thread:$0]  %s33_s23, 128, %s35_s25, [#allocation7], %s1307_s29, %s1307_s29, %s1308_s30  }
   0x7   :  { %s1309_s7 = smov [#allocation9]   ;;  %s1310_s9 = smov 128  }
   0x8   :  { %s60_s8 = sshll.u32 %s1309_s7, 4  ;;  %s1311_s1 = smov 8   ;;  %s61_s8 = int_to_ptr.vmem [resolvable:$true] %s60_s8 }
   0x9   :  { %66 = dma.hbm_to_vmem [thread:$0]  %s59_s28, 256, %s61_s8, [#allocation10], %s1310_s9, %s1310_s9, %s1311_s1  }
   0xa   :  { %s19_s12 = sshll.u32 %s1607_s0, 4  ;;  %s1312_s13 = smov [#allocation3]   ;;  %s20_s12 = int_to_ptr.hbm [resolvable:$true] %s19_s12 }
   0xb   :  { %s21_s3 = sshll.u32 %s1312_s13, 4  ;;  %s45_s16 = sshll.u32 %s1609_s2, 4  ;;  %s22_s3 = int_to_ptr.vmem [resolvable:$true] %s21_s3  ;;  %s46_s16 = int_to_ptr.hbm [resolvable:$true] %s45_s16 }
   0xc   :  { %27 = dma.hbm_to_vmem [thread:$0]  %s20_s12, 128, %s22_s3, [#allocation4], %s1307_s29, %s1307_s29, %s1308_s30  }
   0xd   :  { %s1313_s17 = smov [#allocation8]   ;;  %s71_s21 = sshll.u32 %s1611_s4, 4  ;;  %s72_s21 = int_to_ptr.hbm [resolvable:$true] %s71_s21 }
   0xe   :  { %s47_s18 = sshll.u32 %s1313_s17, 4  ;;  %s1314_s0 = smov [#allocation11]   ;;  %s48_s18 = int_to_ptr.vmem [resolvable:$true] %s47_s18 }
   0xf   :  { %53 = dma.hbm_to_vmem [thread:$0]  %s46_s16, 768, %s48_s18, [#allocation7], %s1307_s29, %s1307_s29, %s1308_s30  }
  0x10   :  { %s73_s22 = sshll.u32 %s1314_s0, 4  ;;  %s74_s22 = int_to_ptr.vmem [resolvable:$true] %s73_s22 }
  0x11   :  { %79 = dma.hbm_to_vmem [thread:$0]  %s72_s21, 256, %s74_s22, [#allocation10], %s1307_s29, %s1307_s29, %s1308_s30  }
  0x12   :  { %1298 = dma.done.wait [#allocation4], 128  }
  0x13   :  { %1299 = vsyncadd [#allocation4], 4294967168 }
  0x14   :  { %1300 = dma.done.wait [#allocation7], 896  }
  0x15   :  { %1301 = vsyncadd [#allocation7], 4294966400 }
  0x16   :  { %1302 = dma.done.wait [#allocation10], 512  }
  0x17   :  { %1303 = vsyncadd [#allocation10], 4294966784  ;;  %v1021_v0 = vld [vmem:[#allocation6] sm:$0xff]  ;;  %v1020_v1 = vld [vmem:[#allocation3] sm:$0xff]  ;;  %vm118_vm0 = vcmask 130048   ;;  %v136_v2 = vlaneseq  ;;  %v1315_v7 = vmov 0.0  }
  0x18   :  { %129 = vmatpush.bf16.msra.mxu0 %v1021_v0  ;;  %v1027_v10 = vld [vmem:[#allocation8 + $0x28] sm:$0xff]  ;;  %v1026_v11 = vld [vmem:[#allocation8 + $0x20] sm:$0xff]  ;;  %v1025_v12 = vld [vmem:[#allocation8 + $0x18] sm:$0xff]  ;;  %s1316_s2 = smov 32   ;;  %vm219_vm7 = vcmask 261120   ;;  %vm222_vm8 = vcmask 523264  }
  0x19   :  { %v1381_v3 = vshrl.u32 %v136_v2, 7  ;;  %268 = vmatpush.bf16.msra.mxu1 %v1027_v10  ;;  %406 = vmatpush.bf16.msra.mxu2 %v1027_v10  ;;  %v1024_v25 = vld [vmem:[#allocation8 + $0x10] sm:$0xff]  ;;  %v1023_v26 = vld [vmem:[#allocation8 + $0x8] sm:$0xff]  ;;  %v1022_v27 = vld [vmem:[#allocation8] sm:$0xff]  ;;  %vm262_vm9 = vcmask 785408   ;;  %s1317_s4 = smov 96  }
  0x1a   :  { %538 = vmatpush.bf16.msra.mxu3 %v1027_v10  ;;  %v1424_v45 = vld [vmem:[#allocation9] sm:$0xff]  ;;  %v1428_v48 = vld [vmem:[#allocation9 + $0x8] sm:$0xff]  ;;  %s1318_s25 = smov [#allocation12]  }
  0x1b   :  { %967 = vmatmul.msk.bf16.vlgmr.msra.gmra.mxu0 %vm118_vm0, %v1020_v1  ;;  %v138_v4 = vadd.s32 8, %v1381_v3  ;;  %v143_v5 = vand.u32 7, %v1381_v3  ;;  %vm198_vm5 = vcmp.lt.s32.totalorder %v1381_v3, 7  ;;  %vm191_vm6 = vcmp.lt.s32.totalorder %v1381_v3, 1  ;;  %s945_s26 = sshll.u32 %s1318_s25, 4  ;;  %s946_s26 = int_to_ptr.vmem [resolvable:$true] %s945_s26 }
  0x1c   :  { %670 = vmatpush.bf16.msrb.mxu0 %v1027_v10 }
  0x1d   :  { %v150_v6 = vand.u32 7, %v138_v4  ;;  %vm163_vm1 = vcmp.ne.s32.totalorder %v143_v5, 0  ;;  %269 = vmatpush.bf16.msra.mxu1 %v1026_v11  ;;  %407 = vmatpush.bf16.msra.mxu2 %v1026_v11  ;;  %vm169_vm3 = vcmp.ne.s32.totalorder %v143_v5, 7 }
  0x1e   :  { %v1385_v8 = vsel %vm163_vm1, 1.0, %v1315_v7  ;;  %539 = vmatpush.bf16.msra.mxu3 %v1026_v11  ;;  %v1396_v17 = vsel %vm169_vm3, 1.0, %v1315_v7 }
  0x1f   :  { %vm164_vm2 = vcmp.ne.s32.totalorder %v150_v6, 0  ;;  %vm170_vm4 = vcmp.ne.s32.totalorder %v150_v6, 7 }
  0x20   :  { %v1387_v9 = vsel %vm164_vm2, 1.0, %v1315_v7  ;;  %671 = vmatpush.bf16.msrb.mxu0 %v1026_v11  ;;  %v1398_v18 = vsel %vm170_vm4, 1.0, %v1315_v7 }
  0x21   :  { %270 = vmatpush.bf16.msra.mxu1 %v1025_v12  ;;  %408 = vmatpush.bf16.msra.mxu2 %v1025_v12 }
  0x22   :  { %540 = vmatpush.bf16.msra.mxu3 %v1025_v12 }
  0x24   :  { %672 = vmatpush.bf16.msrb.mxu0 %v1025_v12 }
  0x25   :  { %271 = vmatpush.bf16.msra.mxu1 %v1024_v25  ;;  %409 = vmatpush.bf16.msra.mxu2 %v1024_v25 }
  0x26   :  { %541 = vmatpush.bf16.msra.mxu3 %v1024_v25 }
  0x28   :  { %673 = vmatpush.bf16.msrb.mxu0 %v1024_v25 }
  0x29   :  { %272 = vmatpush.bf16.msra.mxu1 %v1023_v26  ;;  %410 = vmatpush.bf16.msra.mxu2 %v1023_v26 }
  0x2a   :  { %542 = vmatpush.bf16.msra.mxu3 %v1023_v26 }
  0x2c   :  { %674 = vmatpush.bf16.msrb.mxu0 %v1023_v26 }
  0x2d   :  { %273 = vmatpush.bf16.msra.mxu1 %v1022_v27  ;;  %411 = vmatpush.bf16.msra.mxu2 %v1022_v27 }
  0x2e   :  { %543 = vmatpush.bf16.msra.mxu3 %v1022_v27 }
  0x30   :  { %675 = vmatpush.bf16.msrb.mxu0 %v1022_v27 }
  0x31   :  { %802 = vmatpush.bf16.msrb.mxu1 %v1027_v10 }
  0x35   :  { %803 = vmatpush.bf16.msrb.mxu1 %v1026_v11 }
  0x39   :  { %804 = vmatpush.bf16.msrb.mxu1 %v1025_v12 }
  0x3d   :  { %805 = vmatpush.bf16.msrb.mxu1 %v1024_v25 }
  0x41   :  { %806 = vmatpush.bf16.msrb.mxu1 %v1023_v26 }
  0x45   :  { %807 = vmatpush.bf16.msrb.mxu1 %v1022_v27 }
  0x98   :  { %v1389_v13 = vpop.f32.mrf.mxu0 }
  0x99   :  { %v196_v15 = vrot.slane %v1389_v13, 1  ;;  %v189_v30 = vrot.slane %v1389_v13, 7 }
  0xa0   :  { %v1391_v14 = vpop.f32.mrf.mxu0 }
  0xa1   :  { %v197_v16 = vrot.slane %v1391_v14, 1  ;;  %v1048_v24 = vpack.i.bf16 %v1391_v14, %v1389_v13  ;;  %v190_v29 = vrot.slane %v1391_v14, 7 }
  0xa3   :  { %v199_v19 = vsel %vm198_vm5, %v196_v15, %v197_v16  ;;  %v200_v20 = vsel %vm198_vm5, %v197_v16, %v196_v15  ;;  %v192_v31 = vsel %vm191_vm6, %v189_v30, %v190_v29  ;;  %v193_v32 = vsel %vm191_vm6, %v190_v29, %v189_v30 }
  0xa4   :  { %v201_v21 = vmul.f32 %v1396_v17, %v199_v19  ;;  %v202_v22 = vmul.f32 %v1398_v18, %v200_v20  ;;  %v194_v35 = vmul.f32 %v1385_v8, %v193_v32  ;;  %v195_v36 = vmul.f32 %v1387_v9, %v192_v31 }
  0xa6   :  { %v1043_v23 = vpack.i.bf16 %v202_v22, %v201_v21 }
  0xa8   :  { %1044 = vrot.lane.b32.xlu0 %v1043_v23, %s1316_s2 }
  0xb0   :  { %1049 = vrot.lane.b32.xlu0 %v1048_v24, %s1307_s29 }
 0x11a   :  { %v1045_v28 = vpop.permute.xlu0 %1044 }
 0x11b   :  { %v1047_v33 = vunpack.i.h.bf16 %v1045_v28  ;;  %v1046_v34 = vunpack.i.l.bf16 %v1045_v28 }
 0x11d   :  { %v220_v40 = vsel %vm219_vm7, %v194_v35, %v1046_v34  ;;  %v221_v41 = vsel %vm219_vm7, %v195_v36, %v1047_v33 }
 0x122   :  { %v1050_v37 = vpop.permute.xlu0 %1049 }
 0x123   :  { %v1052_v38 = vunpack.i.h.bf16 %v1050_v37  ;;  %v1051_v39 = vunpack.i.l.bf16 %v1050_v37 }
 0x125   :  { %v223_v42 = vsel %vm222_vm8, %v220_v40, %v1051_v39  ;;  %v224_v43 = vsel %vm222_vm8, %v221_v41, %v1052_v38 }
 0x126   :  { %v225_v44 = vpack.c.bf16 %v224_v43, %v223_v42 }
 0x128   :  { %996 = vmatmul.msk.bf16.vlgmr.msra.gmra.mxu1 %vm262_vm9, %v225_v44 }
 0x1a5   :  { %v275_v46 = vpop.f32.mrf.mxu1 }
 0x1a6   :  { %v276_v47 = vadd.f32 %v275_v46, %v1424_v45 }
 0x1a8   :  { %320 = vrot.lane.b32.xlu1 %v276_v47, %s1316_s2  ;;  %v997_v51 = vmul.f32 -1.442695, %v276_v47 }
 0x1aa   :  { %1094 = vpow2.f32 %v997_v51 }
 0x1ad   :  { %v277_v49 = vpop.f32.mrf.mxu1 }
 0x1ae   :  { %v278_v50 = vadd.f32 %v277_v49, %v1428_v48 }
 0x1b0   :  { %322 = vrot.lane.b32.xlu1 %v278_v50, %s1316_s2  ;;  %v998_v52 = vmul.f32 -1.442695, %v278_v50  ;;  %v1095_v53 = vpop.eup %1094 }
 0x1b1   :  { %v286_v54 = vadd.f32 1.0, %v1095_v53 }
 0x1b2   :  { %1096 = vpow2.f32 %v998_v52 }
 0x1b3   :  { %1098 = vrcp.f32 %v286_v54  ;;  %v299_v1 = vand.u32 2147483648, %v286_v54  ;;  %vm293_vm11 = vweird.f32 %v286_v54  ;;  %v297_v2 = vand.u32 2147483647, %v286_v54 }
 0x1b5   :  { %v300_v6 = vor.u32 1.1754944e-38, %v299_v1  ;;  %vm298_vm13 = vcmp.eq.f32.partialorder %v297_v2, 8.507059e+37 }
 0x1b8   :  { %v1097_v55 = vpop.eup %1096 }
 0x1b9   :  { %v287_v56 = vadd.f32 1.0, %v1097_v55  ;;  %v1099_v57 = vpop.eup %1098 }
 0x1ba   :  { %v289_v58 = vmul.f32 %v1099_v57, %v286_v54  ;;  %vm294_vm10 = vweird.f32 %v1099_v57 }
 0x1bb   :  { %1100 = vrcp.f32 %v287_v56  ;;  %vm295_vm12 = vmor %vm293_vm11, %vm294_vm10  ;;  %v314_v15 = vand.u32 2147483648, %v287_v56  ;;  %vm308_vm15 = vweird.f32 %v287_v56  ;;  %v312_v16 = vand.u32 2147483647, %v287_v56 }
 0x1bc   :  { %v290_v59 = vsub.f32 1.0, %v289_v58 }
 0x1bd   :  { %v315_v20 = vor.u32 1.1754944e-38, %v314_v15  ;;  %vm313_vm1 = vcmp.eq.f32.partialorder %v312_v16, 8.507059e+37 }
 0x1be   :  { %v291_v61 = vmul.f32 %v1099_v57, %v290_v59 }
 0x1c0   :  { %v292_v63 = vadd.f32 %v1099_v57, %v291_v61 }
 0x1c1   :  { %v1101_v60 = vpop.eup %1100 }
 0x1c2   :  { %v304_v62 = vmul.f32 %v1101_v60, %v287_v56  ;;  %v296_v4 = vsel %vm295_vm12, %v1099_v57, %v292_v63  ;;  %vm309_vm14 = vweird.f32 %v1101_v60 }
 0x1c3   :  { %v301_v10 = vsel %vm298_vm13, %v300_v6, %v296_v4  ;;  %vm310_vm0 = vmor %vm308_vm15, %vm309_vm14 }
 0x1c4   :  { %v305_v0 = vsub.f32 1.0, %v304_v62  ;;  %v340_v31 = vsub.f32 1.0, %v301_v10 }
 0x1c6   :  { %v306_v5 = vmul.f32 %v1101_v60, %v305_v0 }
 0x1c8   :  { %v307_v12 = vadd.f32 %v1101_v60, %v306_v5 }
 0x1ca   :  { %v311_v19 = vsel %vm310_vm0, %v1101_v60, %v307_v12 }
 0x1cb   :  { %v316_v21 = vsel %vm313_vm1, %v315_v20, %v311_v19 }
 0x1cc   :  { %v341_v35 = vsub.f32 1.0, %v316_v21 }
 0x21a   :  { %v321_v7 = vpop.permute.xlu1 %320 }
 0x21b   :  { %v326_v11 = vmul.f32 %v321_v7, %v301_v10 }
 0x21d   :  { %330 = vrot.lane.b32.xlu2 %v326_v11, %s1307_s29 }
 0x222   :  { %v323_v22 = vpop.permute.xlu1 %322 }
 0x223   :  { %v327_v23 = vmul.f32 %v323_v22, %v316_v21 }
 0x225   :  { %332 = vrot.lane.b32.xlu2 %v327_v23, %s1307_s29 }
 0x22d   :  { %352 = vrot.lane.b32.xlu2 %v1389_v13, %s1316_s2 }
 0x277   :  { %v331_v24 = vpop.permute.xlu2 %330 }
 0x278   :  { %v336_v25 = vadd.f32 %v331_v24, %v276_v47 }
 0x27a   :  { %1102 = vtanh.f32 %v336_v25 }
 0x27f   :  { %v333_v26 = vpop.permute.xlu2 %332 }
 0x280   :  { %v1103_v27 = vpop.eup %1102  ;;  %v337_v28 = vadd.f32 %v333_v26, %v278_v50 }
 0x281   :  { %344 = vrot.lane.b32.xlu0 %v1103_v27, %s1317_s4 }
 0x282   :  { %1104 = vtanh.f32 %v337_v28 }
 0x287   :  { %v353_v30 = vpop.permute.xlu2 %352 }
 0x288   :  { %v1105_v29 = vpop.eup %1104  ;;  %v358_v13 = vmul.f32 %v353_v30, %v301_v10 }
 0x289   :  { %354 = vrot.lane.b32.xlu0 %v1391_v14, %s1316_s2  ;;  %346 = vrot.lane.b32.xlu1 %v1105_v29, %s1317_s4 }
 0x2f3   :  { %v345_v32 = vpop.permute.xlu0 %344 }
 0x2f4   :  { %v350_v33 = vmul.f32 %v345_v32, %v340_v31 }
 0x2f6   :  { %v1440_v34 = vadd.f32 %v358_v13, %v350_v33 }
 0x2f8   :  { %364 = vrot.lane.b32.xlu1 %v1440_v34, %s1317_s4 }
 0x2fb   :  { %v355_v36 = vpop.permute.xlu0 %354  ;;  %v347_v37 = vpop.permute.xlu1 %346 }
 0x2fc   :  { %v359_v38 = vmul.f32 %v355_v36, %v316_v21  ;;  %v351_v39 = vmul.f32 %v347_v37, %v341_v35 }
 0x2fe   :  { %v1444_v40 = vadd.f32 %v359_v38, %v351_v39 }
 0x300   :  { %366 = vrot.lane.b32.xlu2 %v1444_v40, %s1317_s4  ;;  %v1058_v14 = vpack.i.bf16 %v1444_v40, %v1440_v34 }
 0x302   :  { %1059 = vrot.lane.b32.xlu1 %v1058_v14, %s1316_s2 }
 0x35a   :  { %v367_v41 = vpop.permute.xlu2 %366 }
 0x35b   :  { %v377_v43 = vrot.slane %v367_v41, 1  ;;  %v371_v53 = vrot.slane %v367_v41, 7 }
 0x36a   :  { %v365_v42 = vpop.permute.xlu1 %364 }
 0x36b   :  { %v376_v44 = vrot.slane %v365_v42, 1  ;;  %v370_v52 = vrot.slane %v365_v42, 7 }
 0x36d   :  { %v378_v46 = vsel %vm198_vm5, %v376_v44, %v377_v43  ;;  %v379_v47 = vsel %vm198_vm5, %v377_v43, %v376_v44  ;;  %v372_v54 = vsel %vm191_vm6, %v370_v52, %v371_v53  ;;  %v373_v55 = vsel %vm191_vm6, %v371_v53, %v370_v52 }
 0x36e   :  { %v380_v49 = vmul.f32 %v1396_v17, %v378_v46  ;;  %v381_v50 = vmul.f32 %v1398_v18, %v379_v47  ;;  %v374_v58 = vmul.f32 %v1385_v8, %v373_v55  ;;  %v375_v59 = vmul.f32 %v1387_v9, %v372_v54 }
 0x370   :  { %v1053_v51 = vpack.i.bf16 %v381_v50, %v380_v49 }
 0x372   :  { %1054 = vrot.lane.b32.xlu0 %v1053_v51, %s1316_s2 }
 0x374   :  { %v1060_v56 = vpop.permute.xlu1 %1059 }
 0x375   :  { %v1062_v62 = vunpack.i.h.bf16 %v1060_v56  ;;  %v1061_v63 = vunpack.i.l.bf16 %v1060_v56 }
 0x3e4   :  { %v1055_v57 = vpop.permute.xlu0 %1054 }
 0x3e5   :  { %v1057_v60 = vunpack.i.h.bf16 %v1055_v57  ;;  %v1056_v61 = vunpack.i.l.bf16 %v1055_v57 }
 0x3e7   :  { %v396_v0 = vsel %vm219_vm7, %v374_v58, %v1056_v61  ;;  %v397_v1 = vsel %vm219_vm7, %v375_v59, %v1057_v60 }
 0x3e8   :  { %v398_v2 = vsel %vm222_vm8, %v396_v0, %v1061_v63  ;;  %v399_v4 = vsel %vm222_vm8, %v397_v1, %v1062_v62 }
 0x3e9   :  { %v400_v5 = vpack.c.bf16 %v399_v4, %v398_v2 }
 0x3eb   :  { %999 = vmatmul.msk.bf16.vlgmr.msra.gmra.mxu2 %vm262_vm9, %v400_v5 }
 0x46e   :  { %v413_v6 = vpop.f32.mrf.mxu2 }
 0x46f   :  { %v414_v7 = vadd.f32 %v413_v6, %v1424_v45 }
 0x471   :  { %458 = vrot.lane.b32.xlu2 %v414_v7, %s1316_s2  ;;  %v1000_v12 = vmul.f32 -1.442695, %v414_v7 }
 0x473   :  { %1106 = vpow2.f32 %v1000_v12 }
 0x476   :  { %v415_v10 = vpop.f32.mrf.mxu2 }
 0x477   :  { %v416_v11 = vadd.f32 %v415_v10, %v1428_v48 }
 0x479   :  { %460 = vrot.lane.b32.xlu0 %v416_v11, %s1316_s2  ;;  %v1107_v15 = vpop.eup %1106  ;;  %v1001_v22 = vmul.f32 -1.442695, %v416_v11 }
 0x47a   :  { %v424_v16 = vadd.f32 1.0, %v1107_v15 }
 0x47c   :  { %1108 = vrcp.f32 %v424_v16  ;;  %v437_v25 = vand.u32 2147483648, %v424_v16  ;;  %vm431_vm3 = vweird.f32 %v424_v16  ;;  %v435_v26 = vand.u32 2147483647, %v424_v16 }
 0x47d   :  { %1110 = vpow2.f32 %v1001_v22 }
 0x47e   :  { %v438_v29 = vor.u32 1.1754944e-38, %v437_v25  ;;  %vm436_vm10 = vcmp.eq.f32.partialorder %v435_v26, 8.507059e+37 }
 0x482   :  { %v1109_v19 = vpop.eup %1108 }
 0x483   :  { %v427_v20 = vmul.f32 %v1109_v19, %v424_v16  ;;  %vm432_vm2 = vweird.f32 %v1109_v19  ;;  %v1111_v27 = vpop.eup %1110 }
 0x484   :  { %vm433_vm4 = vmor %vm431_vm3, %vm432_vm2  ;;  %v425_v30 = vadd.f32 1.0, %v1111_v27 }
 0x485   :  { %v428_v21 = vsub.f32 1.0, %v427_v20 }
 0x486   :  { %1112 = vrcp.f32 %v425_v30  ;;  %v452_v39 = vand.u32 2147483648, %v425_v30  ;;  %vm446_vm12 = vweird.f32 %v425_v30  ;;  %v450_v14 = vand.u32 2147483647, %v425_v30 }
 0x487   :  { %v429_v23 = vmul.f32 %v1109_v19, %v428_v21 }
 0x488   :  { %v453_v42 = vor.u32 1.1754944e-38, %v452_v39  ;;  %vm451_vm14 = vcmp.eq.f32.partialorder %v450_v14, 8.507059e+37 }
 0x489   :  { %v430_v24 = vadd.f32 %v1109_v19, %v429_v23 }
 0x48b   :  { %v434_v28 = vsel %vm433_vm4, %v1109_v19, %v430_v24 }
 0x48c   :  { %v439_v32 = vsel %vm436_vm10, %v438_v29, %v434_v28  ;;  %v1113_v33 = vpop.eup %1112 }
 0x48d   :  { %v442_v35 = vmul.f32 %v1113_v33, %v425_v30  ;;  %vm447_vm11 = vweird.f32 %v1113_v33  ;;  %v478_v54 = vsub.f32 1.0, %v439_v32  ;;  %v490_v56 = vmul.f32 %v439_v32, %v1440_v34 }
 0x48e   :  { %vm448_vm13 = vmor %vm446_vm12, %vm447_vm11 }
 0x48f   :  { %v443_v36 = vsub.f32 1.0, %v442_v35 }
 0x491   :  { %v444_v37 = vmul.f32 %v1113_v33, %v443_v36 }
 0x493   :  { %v445_v38 = vadd.f32 %v1113_v33, %v444_v37 }
 0x495   :  { %v449_v41 = vsel %vm448_vm13, %v1113_v33, %v445_v38 }
 0x496   :  { %v454_v44 = vsel %vm451_vm14, %v453_v42, %v449_v41 }
 0x497   :  { %v479_v59 = vsub.f32 1.0, %v454_v44  ;;  %v491_v61 = vmul.f32 %v454_v44, %v1444_v40 }
 0x4cb   :  { %v459_v31 = vpop.permute.xlu2 %458 }
 0x4cc   :  { %v464_v13 = vmul.f32 %v459_v31, %v439_v32 }
 0x4ce   :  { %468 = vrot.lane.b32.xlu1 %v464_v13, %s1307_s29 }
 0x4eb   :  { %v461_v43 = vpop.permute.xlu0 %460 }
 0x4ec   :  { %v465_v46 = vmul.f32 %v461_v43, %v454_v44 }
 0x4ee   :  { %470 = vrot.lane.b32.xlu2 %v465_v46, %s1307_s29 }
 0x540   :  { %v469_v47 = vpop.permute.xlu1 %468 }
 0x541   :  { %v474_v49 = vadd.f32 %v469_v47, %v414_v7 }
 0x543   :  { %1114 = vtanh.f32 %v474_v49 }
 0x548   :  { %v471_v50 = vpop.permute.xlu2 %470 }
 0x549   :  { %v1115_v51 = vpop.eup %1114  ;;  %v475_v52 = vadd.f32 %v471_v50, %v416_v11 }
 0x54a   :  { %482 = vrot.lane.b32.xlu0 %v1115_v51, %s1317_s4 }
 0x54b   :  { %1116 = vtanh.f32 %v475_v52 }
 0x551   :  { %v1117_v53 = vpop.eup %1116 }
 0x552   :  { %484 = vrot.lane.b32.xlu1 %v1117_v53, %s1317_s4 }
 0x5bc   :  { %v483_v55 = vpop.permute.xlu0 %482 }
 0x5bd   :  { %v488_v57 = vmul.f32 %v483_v55, %v478_v54 }
 0x5bf   :  { %v1478_v58 = vadd.f32 %v490_v56, %v488_v57 }
 0x5c1   :  { %496 = vrot.lane.b32.xlu2 %v1478_v58, %s1317_s4 }
 0x5c4   :  { %v485_v60 = vpop.permute.xlu1 %484 }
 0x5c5   :  { %v489_v62 = vmul.f32 %v485_v60, %v479_v59 }
 0x5c7   :  { %v1483_v63 = vadd.f32 %v491_v61, %v489_v62 }
 0x5c9   :  { %498 = vrot.lane.b32.xlu0 %v1483_v63, %s1317_s4  ;;  %v1068_v0 = vpack.i.bf16 %v1483_v63, %v1478_v58 }
 0x5cb   :  { %1069 = vrot.lane.b32.xlu2 %v1068_v0, %s1316_s2 }
 0x61b   :  { %v497_v34 = vpop.permute.xlu2 %496 }
 0x61c   :  { %v508_v2 = vrot.slane %v497_v34, 1  ;;  %v502_v12 = vrot.slane %v497_v34, 7 }
 0x625   :  { %v1070_v19 = vpop.permute.xlu2 %1069 }
 0x626   :  { %v1072_v25 = vunpack.i.h.bf16 %v1070_v19  ;;  %v1071_v26 = vunpack.i.l.bf16 %v1070_v19 }
 0x63b   :  { %v499_v1 = vpop.permute.xlu0 %498 }
 0x63c   :  { %v509_v4 = vrot.slane %v499_v1, 1  ;;  %v503_v11 = vrot.slane %v499_v1, 7 }
 0x63e   :  { %v510_v5 = vsel %vm198_vm5, %v508_v2, %v509_v4  ;;  %v511_v40 = vsel %vm198_vm5, %v509_v4, %v508_v2  ;;  %v504_v15 = vsel %vm191_vm6, %v502_v12, %v503_v11  ;;  %v505_v16 = vsel %vm191_vm6, %v503_v11, %v502_v12 }
 0x63f   :  { %v512_v6 = vmul.f32 %v1396_v17, %v510_v5  ;;  %v513_v7 = vmul.f32 %v1398_v18, %v511_v40  ;;  %v506_v21 = vmul.f32 %v1385_v8, %v505_v16  ;;  %v507_v22 = vmul.f32 %v1387_v9, %v504_v15 }
 0x641   :  { %v1063_v10 = vpack.i.bf16 %v513_v7, %v512_v6 }
 0x643   :  { %1064 = vrot.lane.b32.xlu1 %v1063_v10, %s1316_s2 }
 0x6b5   :  { %v1065_v20 = vpop.permute.xlu1 %1064 }
 0x6b6   :  { %v1067_v23 = vunpack.i.h.bf16 %v1065_v20  ;;  %v1066_v24 = vunpack.i.l.bf16 %v1065_v20 }
 0x6b8   :  { %v528_v27 = vsel %vm219_vm7, %v506_v21, %v1066_v24  ;;  %v529_v28 = vsel %vm219_vm7, %v507_v22, %v1067_v23 }
 0x6b9   :  { %v530_v29 = vsel %vm222_vm8, %v528_v27, %v1071_v26  ;;  %v531_v30 = vsel %vm222_vm8, %v529_v28, %v1072_v25 }
 0x6ba   :  { %v532_v31 = vpack.c.bf16 %v531_v30, %v530_v29 }
 0x6bc   :  { %1002 = vmatmul.msk.bf16.vlgmr.msra.gmra.mxu3 %vm262_vm9, %v532_v31 }
 0x73f   :  { %v545_v32 = vpop.f32.mrf.mxu3 }
 0x740   :  { %v546_v13 = vadd.f32 %v545_v32, %v1424_v45 }
 0x742   :  { %590 = vrot.lane.b32.xlu0 %v546_v13, %s1316_s2  ;;  %v1003_v36 = vmul.f32 -1.442695, %v546_v13 }
 0x744   :  { %1118 = vpow2.f32 %v1003_v36 }
 0x747   :  { %v547_v33 = vpop.f32.mrf.mxu3 }
 0x748   :  { %v548_v35 = vadd.f32 %v547_v33, %v1428_v48 }
 0x74a   :  { %592 = vrot.lane.b32.xlu1 %v548_v35, %s1316_s2  ;;  %v1004_v37 = vmul.f32 -1.442695, %v548_v35  ;;  %v1119_v38 = vpop.eup %1118 }
 0x74b   :  { %v556_v39 = vadd.f32 1.0, %v1119_v38 }
 0x74c   :  { %1120 = vpow2.f32 %v1004_v37 }
 0x74d   :  { %1122 = vrcp.f32 %v556_v39  ;;  %v569_v52 = vand.u32 2147483648, %v556_v39  ;;  %vm563_vm0 = vweird.f32 %v556_v39  ;;  %v567_v53 = vand.u32 2147483647, %v556_v39 }
 0x74f   :  { %v570_v56 = vor.u32 1.1754944e-38, %v569_v52  ;;  %vm568_vm2 = vcmp.eq.f32.partialorder %v567_v53, 8.507059e+37 }
 0x752   :  { %v1121_v14 = vpop.eup %1120 }
 0x753   :  { %v557_v41 = vadd.f32 1.0, %v1121_v14  ;;  %v1123_v42 = vpop.eup %1122 }
 0x754   :  { %v559_v43 = vmul.f32 %v1123_v42, %v556_v39  ;;  %vm564_vm15 = vweird.f32 %v1123_v42 }
 0x755   :  { %1124 = vrcp.f32 %v557_v41  ;;  %vm565_vm1 = vmor %vm563_vm0, %vm564_vm15  ;;  %v584_v62 = vand.u32 2147483648, %v557_v41  ;;  %vm578_vm4 = vweird.f32 %v557_v41  ;;  %v582_v0 = vand.u32 2147483647, %v557_v41 }
 0x756   :  { %v560_v44 = vsub.f32 1.0, %v559_v43 }
 0x757   :  { %v585_v1 = vor.u32 1.1754944e-38, %v584_v62  ;;  %vm583_vm11 = vcmp.eq.f32.partialorder %v582_v0, 8.507059e+37 }
 0x758   :  { %v561_v47 = vmul.f32 %v1123_v42, %v560_v44 }
 0x75a   :  { %v562_v50 = vadd.f32 %v1123_v42, %v561_v47 }
 0x75b   :  { %v1125_v46 = vpop.eup %1124 }
 0x75c   :  { %v574_v49 = vmul.f32 %v1125_v46, %v557_v41  ;;  %v566_v54 = vsel %vm565_vm1, %v1123_v42, %v562_v50  ;;  %vm579_vm3 = vweird.f32 %v1125_v46 }
 0x75d   :  { %v571_v59 = vsel %vm568_vm2, %v570_v56, %v566_v54  ;;  %vm580_vm10 = vmor %vm578_vm4, %vm579_vm3 }
 0x75e   :  { %v575_v51 = vsub.f32 1.0, %v574_v49  ;;  %v610_v15 = vsub.f32 1.0, %v571_v59  ;;  %v622_v19 = vmul.f32 %v571_v59, %v1478_v58 }
 0x760   :  { %v576_v55 = vmul.f32 %v1125_v46, %v575_v51 }
 0x762   :  { %v577_v61 = vadd.f32 %v1125_v46, %v576_v55 }
 0x764   :  { %v581_v34 = vsel %vm580_vm10, %v1125_v46, %v577_v61 }
 0x765   :  { %v586_v4 = vsel %vm583_vm11, %v585_v1, %v581_v34 }
 0x766   :  { %v611_v22 = vsub.f32 1.0, %v586_v4  ;;  %v623_v24 = vmul.f32 %v586_v4, %v1483_v63 }
 0x7b4   :  { %v591_v57 = vpop.permute.xlu0 %590 }
 0x7b5   :  { %v596_v60 = vmul.f32 %v591_v57, %v571_v59 }
 0x7b7   :  { %600 = vrot.lane.b32.xlu2 %v596_v60, %s1307_s29 }
 0x7bc   :  { %v593_v2 = vpop.permute.xlu1 %592 }
 0x7bd   :  { %v597_v5 = vmul.f32 %v593_v2, %v586_v4 }
 0x7bf   :  { %602 = vrot.lane.b32.xlu0 %v597_v5, %s1307_s29 }
 0x811   :  { %v601_v40 = vpop.permute.xlu2 %600 }
 0x812   :  { %v606_v6 = vadd.f32 %v601_v40, %v546_v13 }
 0x814   :  { %1126 = vtanh.f32 %v606_v6 }
 0x81a   :  { %v1127_v7 = vpop.eup %1126 }
 0x81b   :  { %614 = vrot.lane.b32.xlu1 %v1127_v7, %s1317_s4 }
 0x831   :  { %v603_v10 = vpop.permute.xlu0 %602 }
 0x832   :  { %v607_v11 = vadd.f32 %v603_v10, %v548_v35 }
 0x834   :  { %1128 = vtanh.f32 %v607_v11 }
 0x83a   :  { %v1129_v12 = vpop.eup %1128 }
 0x83b   :  { %616 = vrot.lane.b32.xlu2 %v1129_v12, %s1317_s4 }
 0x88d   :  { %v615_v16 = vpop.permute.xlu1 %614 }
 0x88e   :  { %v620_v20 = vmul.f32 %v615_v16, %v610_v15 }
 0x890   :  { %v1517_v21 = vadd.f32 %v622_v19, %v620_v20 }
 0x892   :  { %628 = vrot.lane.b32.xlu0 %v1517_v21, %s1317_s4 }
 0x895   :  { %v617_v23 = vpop.permute.xlu2 %616 }
 0x896   :  { %v621_v25 = vmul.f32 %v617_v23, %v611_v22 }
 0x898   :  { %v1522_v26 = vadd.f32 %v623_v24, %v621_v25 }
 0x89a   :  { %630 = vrot.lane.b32.xlu1 %v1522_v26, %s1317_s4  ;;  %v1078_v27 = vpack.i.bf16 %v1522_v26, %v1517_v21 }
 0x89c   :  { %1079 = vrot.lane.b32.xlu0 %v1078_v27, %s1316_s2 }
 0x904   :  { %v629_v58 = vpop.permute.xlu0 %628 }
 0x905   :  { %v640_v29 = vrot.slane %v629_v58, 1  ;;  %v634_v36 = vrot.slane %v629_v58, 7 }
 0x90c   :  { %v631_v28 = vpop.permute.xlu1 %630 }
 0x90d   :  { %v641_v30 = vrot.slane %v631_v28, 1  ;;  %v635_v35 = vrot.slane %v631_v28, 7 }
 0x90e   :  { %v1080_v39 = vpop.permute.xlu0 %1079 }
 0x90f   :  { %v642_v31 = vsel %vm198_vm5, %v640_v29, %v641_v30  ;;  %v643_v63 = vsel %vm198_vm5, %v641_v30, %v640_v29  ;;  %v636_v37 = vsel %vm191_vm6, %v634_v36, %v635_v35  ;;  %v637_v38 = vsel %vm191_vm6, %v635_v35, %v634_v36 }
 0x910   :  { %v644_v32 = vmul.f32 %v1396_v17, %v642_v31  ;;  %v645_v13 = vmul.f32 %v1398_v18, %v643_v63  ;;  %v638_v41 = vmul.f32 %v1385_v8, %v637_v38  ;;  %v639_v42 = vmul.f32 %v1387_v9, %v636_v37 }
 0x911   :  { %v1082_v46 = vunpack.i.h.bf16 %v1080_v39  ;;  %v1081_v47 = vunpack.i.l.bf16 %v1080_v39 }
 0x912   :  { %v1073_v33 = vpack.i.bf16 %v645_v13, %v644_v32 }
 0x914   :  { %1074 = vrot.lane.b32.xlu2 %v1073_v33, %s1316_s2 }
 0x96e   :  { %v1075_v14 = vpop.permute.xlu2 %1074 }
 0x96f   :  { %v1077_v43 = vunpack.i.h.bf16 %v1075_v14  ;;  %v1076_v44 = vunpack.i.l.bf16 %v1075_v14 }
 0x971   :  { %v660_v49 = vsel %vm219_vm7, %v638_v41, %v1076_v44  ;;  %v661_v50 = vsel %vm219_vm7, %v639_v42, %v1077_v43 }
 0x972   :  { %v662_v51 = vsel %vm222_vm8, %v660_v49, %v1081_v47  ;;  %v663_v52 = vsel %vm222_vm8, %v661_v50, %v1082_v46 }
 0x973   :  { %v664_v53 = vpack.c.bf16 %v663_v52, %v662_v51 }
 0x975   :  { %1005 = vmatmul.msk.bf16.vlgmr.msrb.gmra.mxu0 %vm262_vm9, %v664_v53 }
 0x9f2   :  { %v677_v54 = vpop.f32.mrf.mxu0 }
 0x9f3   :  { %v678_v55 = vadd.f32 %v677_v54, %v1424_v45 }
 0x9f5   :  { %722 = vrot.lane.b32.xlu1 %v678_v55, %s1316_s2  ;;  %v1006_v62 = vmul.f32 -1.442695, %v678_v55 }
 0x9fa   :  { %v679_v56 = vpop.f32.mrf.mxu0 }
 0x9fb   :  { %v680_v57 = vadd.f32 %v679_v56, %v1428_v48 }
 0x9fd   :  { %724 = vrot.lane.b32.xlu2 %v680_v57, %s1316_s2  ;;  %v1007_v59 = vmul.f32 -1.442695, %v680_v57 }
 0x9ff   :  { %1130 = vpow2.f32 %v1007_v59 }
 0xa05   :  { %v1131_v60 = vpop.eup %1130 }
 0xa06   :  { %v689_v61 = vadd.f32 1.0, %v1131_v60 }
 0xa08   :  { %1132 = vrcp.f32 %v689_v61  ;;  %v716_v7 = vand.u32 2147483648, %v689_v61  ;;  %vm710_vm13 = vweird.f32 %v689_v61  ;;  %v714_v10 = vand.u32 2147483647, %v689_v61 }
 0xa09   :  { %1134 = vpow2.f32 %v1006_v62 }
 0xa0a   :  { %v717_v15 = vor.u32 1.1754944e-38, %v716_v7  ;;  %vm715_vm15 = vcmp.eq.f32.partialorder %v714_v10, 8.507059e+37 }
 0xa0e   :  { %v1133_v0 = vpop.eup %1132 }
 0xa0f   :  { %v1135_v34 = vpop.eup %1134  ;;  %v706_v1 = vmul.f32 %v1133_v0, %v689_v61  ;;  %vm711_vm12 = vweird.f32 %v1133_v0 }
 0xa10   :  { %v688_v2 = vadd.f32 1.0, %v1135_v34  ;;  %vm712_vm14 = vmor %vm710_vm13, %vm711_vm12 }
 0xa11   :  { %v707_v4 = vsub.f32 1.0, %v706_v1 }
 0xa12   :  { %1136 = vrcp.f32 %v688_v2  ;;  %v701_v25 = vand.u32 2147483648, %v688_v2  ;;  %vm695_vm1 = vweird.f32 %v688_v2  ;;  %v699_v27 = vand.u32 2147483647, %v688_v2 }
 0xa13   :  { %v708_v5 = vmul.f32 %v1133_v0, %v707_v4 }
 0xa14   :  { %v702_v28 = vor.u32 1.1754944e-38, %v701_v25  ;;  %vm700_vm3 = vcmp.eq.f32.partialorder %v699_v27, 8.507059e+37 }
 0xa15   :  { %v709_v40 = vadd.f32 %v1133_v0, %v708_v5 }
 0xa17   :  { %v713_v11 = vsel %vm712_vm14, %v1133_v0, %v709_v40 }
 0xa18   :  { %v1137_v6 = vpop.eup %1136  ;;  %v718_v19 = vsel %vm715_vm15, %v717_v15, %v713_v11 }
 0xa19   :  { %v691_v12 = vmul.f32 %v1137_v6, %v688_v2  ;;  %vm696_vm0 = vweird.f32 %v1137_v6  ;;  %v743_v42 = vsub.f32 1.0, %v718_v19  ;;  %v755_v44 = vmul.f32 %v718_v19, %v1522_v26 }
 0xa1a   :  { %vm697_vm2 = vmor %vm695_vm1, %vm696_vm0 }
 0xa1b   :  { %v692_v22 = vsub.f32 1.0, %v691_v12 }
 0xa1d   :  { %v693_v23 = vmul.f32 %v1137_v6, %v692_v22 }
 0xa1f   :  { %v694_v24 = vadd.f32 %v1137_v6, %v693_v23 }
 0xa21   :  { %v698_v58 = vsel %vm697_vm2, %v1137_v6, %v694_v24 }
 0xa22   :  { %v703_v30 = vsel %vm700_vm3, %v702_v28, %v698_v58 }
 0xa23   :  { %v742_v37 = vsub.f32 1.0, %v703_v30  ;;  %v754_v39 = vmul.f32 %v703_v30, %v1517_v21 }
 0xa57   :  { %v725_v16 = vpop.permute.xlu2 %724 }
 0xa58   :  { %v729_v20 = vmul.f32 %v725_v16, %v718_v19 }
 0xa5a   :  { %734 = vrot.lane.b32.xlu1 %v729_v20, %s1307_s29 }
 0xa67   :  { %v723_v29 = vpop.permute.xlu1 %722 }
 0xa68   :  { %v728_v31 = vmul.f32 %v723_v29, %v703_v30 }
 0xa6a   :  { %732 = vrot.lane.b32.xlu0 %v728_v31, %s1307_s29 }
 0xacc   :  { %v735_v63 = vpop.permute.xlu1 %734 }
 0xacd   :  { %v739_v32 = vadd.f32 %v735_v63, %v680_v57 }
 0xacf   :  { %1138 = vtanh.f32 %v739_v32 }
 0xad5   :  { %v1139_v13 = vpop.eup %1138 }
 0xad6   :  { %748 = vrot.lane.b32.xlu0 %v1139_v13, %s1317_s4 }
 0xadc   :  { %v733_v33 = vpop.permute.xlu0 %732 }
 0xadd   :  { %v738_v35 = vadd.f32 %v733_v33, %v678_v55 }
 0xadf   :  { %1140 = vtanh.f32 %v738_v35 }
 0xae5   :  { %v1141_v36 = vpop.eup %1140 }
 0xae6   :  { %746 = vrot.lane.b32.xlu2 %v1141_v36, %s1317_s4 }
 0xb40   :  { %v747_v38 = vpop.permute.xlu2 %746 }
 0xb41   :  { %v752_v14 = vmul.f32 %v747_v38, %v742_v37 }
 0xb43   :  { %v1556_v41 = vadd.f32 %v754_v39, %v752_v14 }
 0xb45   :  { %760 = vrot.lane.b32.xlu1 %v1556_v41, %s1317_s4 }
 0xb48   :  { %v749_v43 = vpop.permute.xlu0 %748 }
 0xb49   :  { %v753_v46 = vmul.f32 %v749_v43, %v743_v42 }
 0xb4b   :  { %v1561_v47 = vadd.f32 %v755_v44, %v753_v46 }
 0xb4d   :  { %762 = vrot.lane.b32.xlu2 %v1561_v47, %s1317_s4  ;;  %v1088_v49 = vpack.i.bf16 %v1561_v47, %v1556_v41 }
 0xb4f   :  { %1089 = vrot.lane.b32.xlu1 %v1088_v49, %s1316_s2 }
 0xba7   :  { %v763_v21 = vpop.permute.xlu2 %762 }
 0xba8   :  { %v773_v51 = vrot.slane %v763_v21, 1  ;;  %v767_v59 = vrot.slane %v763_v21, 7 }
 0xbb7   :  { %v761_v50 = vpop.permute.xlu1 %760 }
 0xbb8   :  { %v772_v52 = vrot.slane %v761_v50, 1  ;;  %v766_v57 = vrot.slane %v761_v50, 7 }
 0xbba   :  { %v774_v53 = vsel %vm198_vm5, %v772_v52, %v773_v51  ;;  %v775_v26 = vsel %vm198_vm5, %v773_v51, %v772_v52  ;;  %v768_v60 = vsel %vm191_vm6, %v766_v57, %v767_v59  ;;  %v769_v61 = vsel %vm191_vm6, %v767_v59, %v766_v57 }
 0xbbb   :  { %v776_v54 = vmul.f32 %v1396_v17, %v774_v53  ;;  %v777_v55 = vmul.f32 %v1398_v18, %v775_v26  ;;  %v770_v34 = vmul.f32 %v1385_v8, %v769_v61  ;;  %v771_v1 = vmul.f32 %v1387_v9, %v768_v60 }
 0xbbd   :  { %v1083_v56 = vpack.i.bf16 %v777_v55, %v776_v54 }
 0xbbf   :  { %1084 = vrot.lane.b32.xlu0 %v1083_v56, %s1316_s2 }
 0xbc1   :  { %v1090_v62 = vpop.permute.xlu1 %1089 }
 0xbc2   :  { %v1092_v18 = vunpack.i.h.bf16 %v1090_v62  ;;  %v1091_v4 = vunpack.i.l.bf16 %v1090_v62 }
 0xc31   :  { %v1085_v0 = vpop.permute.xlu0 %1084 }
 0xc32   :  { %v1087_v17 = vunpack.i.h.bf16 %v1085_v0  ;;  %v1086_v2 = vunpack.i.l.bf16 %v1085_v0  ;;  %v1029_v0 = vld [vmem:[#allocation11 + $0x8] sm:$0xff] }
 0xc33   :  { %932 = vmatpush.bf16.msrb.mxu2 %v1029_v0 }
 0xc34   :  { %v792_v5 = vsel %vm219_vm7, %v770_v34, %v1086_v2  ;;  %v793_v40 = vsel %vm219_vm7, %v771_v1, %v1087_v17  ;;  %v1028_v1 = vld [vmem:[#allocation11] sm:$0xff] }
 0xc35   :  { %v794_v6 = vsel %vm222_vm8, %v792_v5, %v1091_v4  ;;  %v795_v7 = vsel %vm222_vm8, %v793_v40, %v1092_v18 }
 0xc36   :  { %v796_v3 = vpack.c.bf16 %v795_v7, %v794_v6 }
 0xc37   :  { %933 = vmatpush.bf16.msrb.mxu2 %v1028_v1 }
 0xc38   :  { %1008 = vmatmul.msk.bf16.vlgmr.msrb.gmra.mxu1 %vm262_vm9, %v796_v3 }
 0xcb5   :  { %v809_v10 = vpop.f32.mrf.mxu1 }
 0xcb6   :  { %v810_v8 = vadd.f32 %v809_v10, %v1424_v45 }
 0xcb8   :  { %854 = vrot.lane.b32.xlu2 %v810_v8, %s1316_s2  ;;  %v1009_v12 = vmul.f32 -1.442695, %v810_v8 }
 0xcba   :  { %1142 = vpow2.f32 %v1009_v12 }
 0xcbd   :  { %v811_v9 = vpop.f32.mrf.mxu1 }
 0xcbe   :  { %v812_v11 = vadd.f32 %v811_v9, %v1428_v48 }
 0xcc0   :  { %856 = vrot.lane.b32.xlu0 %v812_v11, %s1316_s2  ;;  %v1143_v15 = vpop.eup %1142  ;;  %v1010_v23 = vmul.f32 -1.442695, %v812_v11 }
 0xcc1   :  { %v820_v16 = vadd.f32 1.0, %v1143_v15 }
 0xcc3   :  { %1144 = vrcp.f32 %v820_v16  ;;  %v833_v45 = vand.u32 2147483648, %v820_v16  ;;  %vm827_vm6 = vweird.f32 %v820_v16  ;;  %v831_v27 = vand.u32 2147483647, %v820_v16 }
 0xcc4   :  { %1146 = vpow2.f32 %v1010_v23 }
 0xcc5   :  { %v834_v28 = vor.u32 1.1754944e-38, %v833_v45  ;;  %vm832_vm9 = vcmp.eq.f32.partialorder %v831_v27, 8.507059e+37 }
 0xcc9   :  { %v1145_v19 = vpop.eup %1144 }
 0xcca   :  { %v823_v20 = vmul.f32 %v1145_v19, %v820_v16  ;;  %vm828_vm5 = vweird.f32 %v1145_v19  ;;  %v1147_v48 = vpop.eup %1146 }
 0xccb   :  { %vm829_vm8 = vmor %vm827_vm6, %vm828_vm5  ;;  %v821_v29 = vadd.f32 1.0, %v1147_v48 }
 0xccc   :  { %v824_v22 = vsub.f32 1.0, %v823_v20 }
 0xccd   :  { %1148 = vrcp.f32 %v821_v29  ;;  %v848_v37 = vand.u32 2147483648, %v821_v29  ;;  %vm842_vm10 = vweird.f32 %v821_v29  ;;  %v846_v38 = vand.u32 2147483647, %v821_v29 }
 0xcce   :  { %v825_v24 = vmul.f32 %v1145_v19, %v824_v22 }
 0xccf   :  { %v849_v14 = vor.u32 1.1754944e-38, %v848_v37  ;;  %vm847_vm12 = vcmp.eq.f32.partialorder %v846_v38, 8.507059e+37 }
 0xcd0   :  { %v826_v25 = vadd.f32 %v1145_v19, %v825_v24 }
 0xcd2   :  { %v830_v58 = vsel %vm829_vm8, %v1145_v19, %v826_v25 }
 0xcd3   :  { %v835_v31 = vsel %vm832_vm9, %v834_v28, %v830_v58  ;;  %v1149_v32 = vpop.eup %1148 }
 0xcd4   :  { %v838_v13 = vmul.f32 %v1149_v32, %v821_v29  ;;  %vm843_vm4 = vweird.f32 %v1149_v32  ;;  %v874_v53 = vsub.f32 1.0, %v835_v31  ;;  %v886_v54 = vmul.f32 %v835_v31, %v1556_v41 }
 0xcd5   :  { %vm844_vm11 = vmor %vm842_vm10, %vm843_vm4 }
 0xcd6   :  { %v839_v33 = vsub.f32 1.0, %v838_v13 }
 0xcd8   :  { %v840_v35 = vmul.f32 %v1149_v32, %v839_v33 }
 0xcda   :  { %v841_v36 = vadd.f32 %v1149_v32, %v840_v35 }
 0xcdc   :  { %v845_v39 = vsel %vm844_vm11, %v1149_v32, %v841_v36 }
 0xcdd   :  { %v850_v43 = vsel %vm847_vm12, %v849_v14, %v845_v39 }
 0xcde   :  { %v875_v57 = vsub.f32 1.0, %v850_v43  ;;  %v887_v60 = vmul.f32 %v850_v43, %v1561_v47  ;;  %v1093_v47 = vld [vmem:[%s1612_s5] ss:$0 sm:$0xff] }
 0xd12   :  { %v855_v30 = vpop.permute.xlu2 %854 }
 0xd13   :  { %v860_v63 = vmul.f32 %v855_v30, %v835_v31 }
 0xd15   :  { %864 = vrot.lane.b32.xlu1 %v860_v63, %s1307_s29 }
 0xd32   :  { %v857_v42 = vpop.permute.xlu0 %856 }
 0xd33   :  { %v861_v44 = vmul.f32 %v857_v42, %v850_v43 }
 0xd35   :  { %866 = vrot.lane.b32.xlu2 %v861_v44, %s1307_s29  ;;  %s947_s29 = sshll.u32 %s1613_s6, 4  ;;  %s948_s29 = int_to_ptr.hbm [resolvable:$true] %s947_s29 }
 0xd87   :  { %v865_v46 = vpop.permute.xlu1 %864 }
 0xd88   :  { %v870_v49 = vadd.f32 %v865_v46, %v810_v8 }
 0xd8a   :  { %1150 = vtanh.f32 %v870_v49 }
 0xd8f   :  { %v867_v21 = vpop.permute.xlu2 %866 }
 0xd90   :  { %v1151_v50 = vpop.eup %1150  ;;  %v871_v51 = vadd.f32 %v867_v21, %v812_v11 }
 0xd91   :  { %878 = vrot.lane.b32.xlu0 %v1151_v50, %s1317_s4 }
 0xd92   :  { %1152 = vtanh.f32 %v871_v51 }
 0xd98   :  { %v1153_v52 = vpop.eup %1152 }
 0xd99   :  { %880 = vrot.lane.b32.xlu1 %v1153_v52, %s1317_s4 }
 0xe03   :  { %v879_v26 = vpop.permute.xlu0 %878 }
 0xe04   :  { %v884_v55 = vmul.f32 %v879_v26, %v874_v53 }
 0xe06   :  { %v888_v56 = vadd.f32 %v886_v54, %v884_v55 }
 0xe08   :  { %892 = vrot.lane.b32.xlu2 %v888_v56, %s1317_s4 }
 0xe0b   :  { %v881_v59 = vpop.permute.xlu1 %880 }
 0xe0c   :  { %v885_v61 = vmul.f32 %v881_v59, %v875_v57 }
 0xe0e   :  { %v889_v62 = vadd.f32 %v887_v60, %v885_v61 }
 0xe10   :  { %894 = vrot.lane.b32.xlu0 %v889_v62, %s1317_s4 }
 0xe62   :  { %v893_v34 = vpop.permute.xlu2 %892 }
 0xe63   :  { %898 = vst.msk [vmem:[#allocation2] sm:$0xff] %vm219_vm7, %v893_v34 }
 0xe82   :  { %v895_v41 = vpop.permute.xlu0 %894 }
 0xe83   :  { %899 = vst.msk [vmem:[#allocation2 + $0x8] sm:$0xff] %vm219_vm7, %v895_v41 }
 0xe8a   :  { %v901_v17 = vld [vmem:[#allocation2 + $0x7] ss:$8 sm:$0x3] }
 0xe8b   :  { %v902_v2 = vpack.c.bf16 %v901_v17, %v901_v17 }
 0xe8d   :  { %1019 = vmatmul.msk.bf16.vlgmr.msrb.gmra.mxu2 %vm219_vm7, %v902_v2 }
 0xf10   :  { %v935_v18 = vpop.f32.mrf.mxu2 }
 0xf11   :  { %v936_v4 = vadd.f32 %v1093_v47, %v935_v18 }
 0xf13   :  { %939 = vst [vmem:[#allocation12] sm:$0x3] %v936_v4 }
 0xf14   :  { %950 = dma.vmem_to_hbm [thread:$0]  %s946_s26, 32, %s948_s29, [#allocation5]  }
 0xf18   :  { %v937_v5 = vpop.f32.mrf.mxu2 }
 0xf19   :  { %1304 = dma.done.wait [#allocation5], 32  }
 0xf1a   :  { %1305 = vsyncadd [#allocation5], 4294967264 }
 0xf1b   :  { %955 = vsyncpa [#allocation4], 1 }
 0xf1c   :  { %956 = vsyncpa [#allocation7], 1 }
 0xf1d   :  { %957 = vsyncpa [#allocation10], 1 }
 0xf1e   :  { %958 = vsyncpa [#allocation5], 1 }

</bundles_post_ra>
